<compile_context>
chip_gen: v5e
topology: v5e:2x2
jax: 0.10.0
libtpu: 0.0.40
codegen_flags: <defaults>
</compile_context>

<pallas_src>
import functools

import jax
import jax.numpy as jnp
from jax.experimental import pallas as pl
from jax.experimental.pallas import tpu as pltpu


def _pick_tile(n, preferred):
    """Largest 'nice' tile that divides n (falls back to n itself)."""
    for t in (preferred, 512, 256, 128, 64, 32, 16, 8):
        if t <= n and n % t == 0:
            return t
    return n


# ---------------------------------------------------------------------------
# Stage 1: QKV projection   q|k|v = x @ (Wq|Wk|Wv)      (qkv_bias=False)
# ---------------------------------------------------------------------------
def _qkv_proj_kernel(x_ref, wq_ref, wk_ref, wv_ref, q_ref, k_ref, v_ref):
    x = x_ref[...]                                            # (tm, C) bf16
    q_ref[...] = jnp.dot(x, wq_ref[...],
                         preferred_element_type=jnp.float32).astype(q_ref.dtype)
    k_ref[...] = jnp.dot(x, wk_ref[...],
                         preferred_element_type=jnp.float32).astype(k_ref.dtype)
    v_ref[...] = jnp.dot(x, wv_ref[...],
                         preferred_element_type=jnp.float32).astype(v_ref.dtype)


# ---------------------------------------------------------------------------
# Stage 2: flash attention (online softmax over kv tiles, all heads batched)
#          fused with the output projection + bias.
# ---------------------------------------------------------------------------
def _flash_attn_proj_kernel(q_ref, k_ref, v_ref, wp_ref, bp_ref, o_ref,
                            m_sc, l_sc, acc_sc, *, num_heads, head_dim):
    ki = pl.program_id(2)

    @pl.when(ki == 0)
    def _init():
        m_sc[...] = jnp.full(m_sc.shape, -jnp.inf, dtype=m_sc.dtype)
        l_sc[...] = jnp.zeros(l_sc.shape, dtype=l_sc.dtype)
        acc_sc[...] = jnp.zeros(acc_sc.shape, dtype=acc_sc.dtype)

    q = q_ref[0]                                              # (H, tq, hd) bf16 (pre-scaled)
    k = k_ref[0]                                              # (H, tk, hd) bf16
    v = v_ref[0]                                              # (H, tk, hd) bf16

    # All heads in one batched MXU contraction, f32 accumulation.
    s = jnp.einsum("hqd,hkd->hqk", q, k,
                   preferred_element_type=jnp.float32)        # (H, tq, tk) f32

    m_prev = m_sc[...]
    m_new = jnp.maximum(m_prev, jnp.max(s, axis=-1, keepdims=True))
    alpha = jnp.exp(m_prev - m_new)
    p = jnp.exp(s - m_new)                                    # (H, tq, tk) f32
    l_sc[...] = alpha * l_sc[...] + jnp.sum(p, axis=-1, keepdims=True)
    acc_sc[...] = alpha * acc_sc[...] + jnp.einsum(
        "hqk,hkd->hqd", p.astype(v.dtype), v,
        preferred_element_type=jnp.float32)                   # (H, tq, hd) f32
    m_sc[...] = m_new

    @pl.when(ki == pl.num_programs(2) - 1)
    def _finalize():
        # Normalize (EUP reciprocal), merge heads -> (tq, C), fused projection.
        ctx = acc_sc[...] * pl.reciprocal(l_sc[...], approx=True)
        tq = ctx.shape[1]
        ctx = jnp.transpose(ctx, (1, 0, 2)).reshape(tq, num_heads * head_dim)
        out = jnp.dot(ctx.astype(wp_ref.dtype), wp_ref[...],
                      preferred_element_type=jnp.float32)
        out = out + bp_ref[...]                               # (1, C) bias broadcast
        o_ref[0] = out.astype(o_ref.dtype)                    # lane-dense (tq, C) store


def attention_pallas(x, w_qkv, w_proj, b_proj, *, num_heads,
                     block_m=256, block_q=256, block_k=256):
    """Forward of the Attention module.

    x:      (B, N, C)
    w_qkv:  (C, 3C)  pre-transposed nn.Linear weight (no bias)
    w_proj: (C, C)   pre-transposed
    b_proj: (C,)
    """
    B, N, C = x.shape
    assert C % num_heads == 0
    hd = C // num_heads
    scale = hd ** (-0.5)
    out_dtype = x.dtype
    cdt = jnp.bfloat16                      # MXU operand dtype (f32 accumulation)

    # Split the fused qkv weight; fold the softmax scale into W_q so no
    # per-element score scaling is needed anywhere in the hot loop.
    w_q = (w_qkv[:, 0 * C:1 * C] * scale).astype(cdt)
    w_k = w_qkv[:, 1 * C:2 * C].astype(cdt)
    w_v = w_qkv[:, 2 * C:3 * C].astype(cdt)
    w_p = w_proj.astype(cdt)
    b_p = b_proj.reshape(1, C).astype(jnp.float32)

    x2d = x.astype(cdt).reshape(B * N, C)

    # ------------------------- Stage 1: QKV projection -------------------------
    M = B * N
    tm = _pick_tile(M, block_m)
    q2d, k2d, v2d = pl.pallas_call(
        _qkv_proj_kernel,
        out_shape=tuple(jax.ShapeDtypeStruct((M, C), cdt) for _ in range(3)),
        grid_spec=pltpu.PrefetchScalarGridSpec(
            num_scalar_prefetch=0,
            grid=(M // tm,),
            in_specs=[
                pl.BlockSpec((tm, C), lambda i: (i, 0)),
                pl.BlockSpec((C, C), lambda i: (0, 0)),
                pl.BlockSpec((C, C), lambda i: (0, 0)),
                pl.BlockSpec((C, C), lambda i: (0, 0)),
            ],
            out_specs=[
                pl.BlockSpec((tm, C), lambda i: (i, 0)),
                pl.BlockSpec((tm, C), lambda i: (i, 0)),
                pl.BlockSpec((tm, C), lambda i: (i, 0)),
            ]),
        compiler_params=pltpu.CompilerParams(
            dimension_semantics=("parallel",),
            vmem_limit_bytes=64 * 1024 * 1024),
    )(x2d, w_q, w_k, w_v)

    # (B*N, C) -> (B, H, N, hd): head split done once at the XLA level so the
    # attention kernel sees head-major blocks with no in-loop relayouts.
    def to_heads(t):
        return t.reshape(B, N, num_heads, hd).transpose(0, 2, 1, 3)

    q4, k4, v4 = to_heads(q2d), to_heads(k2d), to_heads(v2d)

    # -------------- Stage 2: flash attention + fused output projection --------------
    tq = _pick_tile(N, block_q)
    tk = _pick_tile(N, block_k)
    kernel = functools.partial(_flash_attn_proj_kernel,
                               num_heads=num_heads, head_dim=hd)
    out = pl.pallas_call(
        kernel,
        out_shape=jax.ShapeDtypeStruct((B, N, C), out_dtype),
        grid_spec=pltpu.PrefetchScalarGridSpec(
            num_scalar_prefetch=0,
            grid=(B, N // tq, N // tk),
            in_specs=[
                pl.BlockSpec((1, num_heads, tq, hd), lambda b, qi, ki: (b, 0, qi, 0)),
                pl.BlockSpec((1, num_heads, tk, hd), lambda b, qi, ki: (b, 0, ki, 0)),
                pl.BlockSpec((1, num_heads, tk, hd), lambda b, qi, ki: (b, 0, ki, 0)),
                # Constant index_map -> weights fetched once and stay VMEM-resident.
                # (On VMEM-tight chips they could additionally be single-buffered
                #  via pipeline_mode=pl.Buffered(1).)
                pl.BlockSpec((C, C), lambda b, qi, ki: (0, 0)),
                pl.BlockSpec((1, C), lambda b, qi, ki: (0, 0)),
            ],
            out_specs=pl.BlockSpec((1, tq, C), lambda b, qi, ki: (b, qi, 0)),
            scratch_shapes=[
                pltpu.VMEM((num_heads, tq, 1), jnp.float32),    # running max  m
                pltpu.VMEM((num_heads, tq, 1), jnp.float32),    # running sum  l
                pltpu.VMEM((num_heads, tq, hd), jnp.float32),   # output accumulator
            ]),
        compiler_params=pltpu.CompilerParams(
            dimension_semantics=("parallel", "parallel", "arbitrary"),
            vmem_limit_bytes=64 * 1024 * 1024),
    )(q4, k4, v4, w_p, b_p)
    return out


def attention_ref(x, w_qkv, w_proj, b_proj, *, num_heads):
    # Pure-JAX (f32) reference mirroring the PyTorch forward.
    B, N, C = x.shape
    hd = C // num_heads
    scale = hd ** (-0.5)
    qkv = (x @ w_qkv).reshape(B, N, 3, num_heads, hd).transpose(2, 0, 3, 1, 4)
    q, k, v = qkv[0], qkv[1], qkv[2]                     # (B, H, N, hd)
    attn = jnp.einsum("bhnd,bhmd->bhnm", q, k) * scale
    attn = jax.nn.softmax(attn, axis=-1)
    o = jnp.einsum("bhnm,bhmd->bhnd", attn, v)
    o = o.transpose(0, 2, 1, 3).reshape(B, N, C)
    return o @ w_proj + b_proj


if __name__ == "__main__":
    B, N, C = 2, 8, 32
    num_heads = 4

    key = jax.random.PRNGKey(0)
    kx, kqkv, kproj, kb = jax.random.split(key, 4)

    x = jax.random.normal(kx, (B, N, C), dtype=jnp.float32)
    # qkv_bias=False in the module -> no qkv bias.
    w_qkv = jax.random.normal(kqkv, (C, 3 * C), dtype=jnp.float32) * 0.05
    w_proj = jax.random.normal(kproj, (C, C), dtype=jnp.float32) * 0.05
    b_proj = jax.random.normal(kb, (C,), dtype=jnp.float32) * 0.05

    fwd = jax.jit(functools.partial(attention_pallas, num_heads=num_heads))
    out = jax.block_until_ready(fwd(x, w_qkv, w_proj, b_proj))

    ref = attention_ref(x, w_qkv, w_proj, b_proj, num_heads=num_heads)
    assert out.shape == (B, N, C)
    # bf16 MXU operands with f32 accumulation -> relaxed tolerance vs f32 ref.
    assert jnp.allclose(out, ref, atol=2e-2, rtol=2e-2), "mismatch vs reference"

    print("KERNEL_OK")
</pallas_src>

<mosaic_0001>
module attributes {stable_mosaic.version = 11 : i64} {
  func.func @_qkv_proj_kernel(%arg0: i32, %arg1: memref<16x32xbf16, #tpu.memory_space<vmem>>, %arg2: memref<32x32xbf16, #tpu.memory_space<vmem>>, %arg3: memref<32x32xbf16, #tpu.memory_space<vmem>>, %arg4: memref<32x32xbf16, #tpu.memory_space<vmem>>, %arg5: memref<16x32xbf16, #tpu.memory_space<vmem>>, %arg6: memref<16x32xbf16, #tpu.memory_space<vmem>>, %arg7: memref<16x32xbf16, #tpu.memory_space<vmem>>) attributes {dimension_semantics = [#tpu.dimension_semantics<parallel>], iteration_bounds = array<i64: 1>, scalar_prefetch = 0 : i64, scratch_operands = 0 : i64, tpu.core_type = #tpu.core_type<tc>, window_params = [{transform_indices = @transform_0, window_bounds = array<i64: 16, 32>}, {pipeline_mode = #tpu.pipeline_mode<synchronous>, transform_indices = @transform_1, window_bounds = array<i64: 32, 32>}, {pipeline_mode = #tpu.pipeline_mode<synchronous>, transform_indices = @transform_2, window_bounds = array<i64: 32, 32>}, {pipeline_mode = #tpu.pipeline_mode<synchronous>, transform_indices = @transform_3, window_bounds = array<i64: 32, 32>}, {transform_indices = @transform_4, window_bounds = array<i64: 16, 32>}, {transform_indices = @transform_5, window_bounds = array<i64: 16, 32>}, {transform_indices = @transform_6, window_bounds = array<i64: 16, 32>}]} {
    %c0 = arith.constant 0 : index
    %c0_0 = arith.constant 0 : index
    %0 = vector.load %arg1[%c0, %c0_0] : memref<16x32xbf16, #tpu.memory_space<vmem>>, vector<16x32xbf16>
    %c0_1 = arith.constant 0 : index
    %c0_2 = arith.constant 0 : index
    %1 = vector.load %arg2[%c0_1, %c0_2] : memref<32x32xbf16, #tpu.memory_space<vmem>>, vector<32x32xbf16>
    %cst = arith.constant dense<0.000000e+00> : vector<16x32xf32>
    %2 = tpu.matmul %0, %1, %cst {dimension_numbers = #tpu.dot_dimension_numbers<[1], [0], [0], [1], [0, 0, 1, 1], [], []>} : vector<16x32xbf16>, vector<32x32xbf16>, vector<16x32xf32> -> vector<16x32xf32>
    %3 = arith.truncf %2 : vector<16x32xf32> to vector<16x32xbf16>
    %c0_3 = arith.constant 0 : index
    %c0_4 = arith.constant 0 : index
    %4 = vector.load %arg5[%c0_3, %c0_4] : memref<16x32xbf16, #tpu.memory_space<vmem>>, vector<16x32xbf16>
    tpu.vector_store %arg5[%c0_3, %c0_4], %3 {strides = array<i32>} : memref<16x32xbf16, #tpu.memory_space<vmem>>, vector<16x32xbf16>,
    %c0_5 = arith.constant 0 : index
    %c0_6 = arith.constant 0 : index
    %5 = vector.load %arg3[%c0_5, %c0_6] : memref<32x32xbf16, #tpu.memory_space<vmem>>, vector<32x32xbf16>
    %cst_7 = arith.constant dense<0.000000e+00> : vector<16x32xf32>
    %6 = tpu.matmul %0, %5, %cst_7 {dimension_numbers = #tpu.dot_dimension_numbers<[1], [0], [0], [1], [0, 0, 1, 1], [], []>} : vector<16x32xbf16>, vector<32x32xbf16>, vector<16x32xf32> -> vector<16x32xf32>
    %7 = arith.truncf %6 : vector<16x32xf32> to vector<16x32xbf16>
    %c0_8 = arith.constant 0 : index
    %c0_9 = arith.constant 0 : index
    %8 = vector.load %arg6[%c0_8, %c0_9] : memref<16x32xbf16, #tpu.memory_space<vmem>>, vector<16x32xbf16>
    tpu.vector_store %arg6[%c0_8, %c0_9], %7 {strides = array<i32>} : memref<16x32xbf16, #tpu.memory_space<vmem>>, vector<16x32xbf16>,
    %c0_10 = arith.constant 0 : index
    %c0_11 = arith.constant 0 : index
    %9 = vector.load %arg4[%c0_10, %c0_11] : memref<32x32xbf16, #tpu.memory_space<vmem>>, vector<32x32xbf16>
    %cst_12 = arith.constant dense<0.000000e+00> : vector<16x32xf32>
    %10 = tpu.matmul %0, %9, %cst_12 {dimension_numbers = #tpu.dot_dimension_numbers<[1], [0], [0], [1], [0, 0, 1, 1], [], []>} : vector<16x32xbf16>, vector<32x32xbf16>, vector<16x32xf32> -> vector<16x32xf32>
    %11 = arith.truncf %10 : vector<16x32xf32> to vector<16x32xbf16>
    %c0_13 = arith.constant 0 : index
    %c0_14 = arith.constant 0 : index
    %12 = vector.load %arg7[%c0_13, %c0_14] : memref<16x32xbf16, #tpu.memory_space<vmem>>, vector<16x32xbf16>
    tpu.vector_store %arg7[%c0_13, %c0_14], %11 {strides = array<i32>} : memref<16x32xbf16, #tpu.memory_space<vmem>>, vector<16x32xbf16>,
    return
  }
  func.func @transform_0(%arg0: i32) -> (i32, i32) {
    %c0_i32 = arith.constant 0 : i32
    %c0_i32_0 = arith.constant 0 : i32
    return %arg0, %c0_i32 : i32, i32
  }
  func.func @transform_1(%arg0: i32) -> (i32, i32) {
    %c0_i32 = arith.constant 0 : i32
    %c0_i32_0 = arith.constant 0 : i32
    %c0_i32_1 = arith.constant 0 : i32
    return %c0_i32, %c0_i32_0 : i32, i32
  }
  func.func @transform_2(%arg0: i32) -> (i32, i32) {
    %c0_i32 = arith.constant 0 : i32
    %c0_i32_0 = arith.constant 0 : i32
    %c0_i32_1 = arith.constant 0 : i32
    return %c0_i32, %c0_i32_0 : i32, i32
  }
  func.func @transform_3(%arg0: i32) -> (i32, i32) {
    %c0_i32 = arith.constant 0 : i32
    %c0_i32_0 = arith.constant 0 : i32
    %c0_i32_1 = arith.constant 0 : i32
    return %c0_i32, %c0_i32_0 : i32, i32
  }
  func.func @transform_4(%arg0: i32) -> (i32, i32) {
    %c0_i32 = arith.constant 0 : i32
    %c0_i32_0 = arith.constant 0 : i32
    return %arg0, %c0_i32 : i32, i32
  }
  func.func @transform_5(%arg0: i32) -> (i32, i32) {
    %c0_i32 = arith.constant 0 : i32
    %c0_i32_0 = arith.constant 0 : i32
    return %arg0, %c0_i32 : i32, i32
  }
  func.func @transform_6(%arg0: i32) -> (i32, i32) {
    %c0_i32 = arith.constant 0 : i32
    %c0_i32_0 = arith.constant 0 : i32
    return %arg0, %c0_i32 : i32, i32
  }
}

module attributes {stable_mosaic.version = 11 : i64} {
  func.func @_flash_attn_proj_kernel(%arg0: i32, %arg1: i32, %arg2: i32, %arg3: memref<1x4x8x8xbf16, #tpu.memory_space<vmem>>, %arg4: memref<1x4x8x8xbf16, #tpu.memory_space<vmem>>, %arg5: memref<1x4x8x8xbf16, #tpu.memory_space<vmem>>, %arg6: memref<32x32xbf16, #tpu.memory_space<vmem>>, %arg7: memref<1x32xf32, #tpu.memory_space<vmem>>, %arg8: memref<1x8x32xf32, #tpu.memory_space<vmem>>, %arg9: memref<4x8x1xf32, #tpu.memory_space<vmem>>, %arg10: memref<4x8x1xf32, #tpu.memory_space<vmem>>, %arg11: memref<4x8x8xf32, #tpu.memory_space<vmem>>) attributes {dimension_semantics = [#tpu.dimension_semantics<parallel>, #tpu.dimension_semantics<parallel>, #tpu.dimension_semantics<arbitrary>], iteration_bounds = array<i64: 2, 1, 1>, scalar_prefetch = 0 : i64, scratch_operands = 3 : i64, tpu.core_type = #tpu.core_type<tc>, window_params = [{transform_indices = @transform_0, window_bounds = array<i64: 1, 4, 8, 8>}, {transform_indices = @transform_1, window_bounds = array<i64: 1, 4, 8, 8>}, {transform_indices = @transform_2, window_bounds = array<i64: 1, 4, 8, 8>}, {pipeline_mode = #tpu.pipeline_mode<synchronous>, transform_indices = @transform_3, window_bounds = array<i64: 32, 32>}, {pipeline_mode = #tpu.pipeline_mode<synchronous>, transform_indices = @transform_4, window_bounds = array<i64: 1, 32>}, {transform_indices = @transform_5, window_bounds = array<i64: 1, 8, 32>}]} {
    %c0_i32 = arith.constant 0 : i32
    %0 = arith.cmpi eq, %arg2, %c0_i32 : i32
    %1 = arith.extui %0 : i1 to i32
    %c0_i32_0 = arith.constant 0 : i32
    %2 = arith.cmpi ne, %1, %c0_i32_0 : i32
    scf.if %2 {
      %cst_35 = arith.constant 0xFF800000 : f32
      %36 = vector.broadcast %cst_35 : f32 to vector<4x8x1xf32>
      %c0_36 = arith.constant 0 : index
      %c0_37 = arith.constant 0 : index
      %c0_38 = arith.constant 0 : index
      %37 = vector.load %arg9[%c0_36, %c0_37, %c0_38] : memref<4x8x1xf32, #tpu.memory_space<vmem>>, vector<4x8x1xf32>
      tpu.vector_store %arg9[%c0_36, %c0_37, %c0_38], %36 {strides = array<i32>} : memref<4x8x1xf32, #tpu.memory_space<vmem>>, vector<4x8x1xf32>,
      %cst_39 = arith.constant 0.000000e+00 : f32
      %38 = vector.broadcast %cst_39 : f32 to vector<4x8x1xf32>
      %c0_40 = arith.constant 0 : index
      %c0_41 = arith.constant 0 : index
      %c0_42 = arith.constant 0 : index
      %39 = vector.load %arg10[%c0_40, %c0_41, %c0_42] : memref<4x8x1xf32, #tpu.memory_space<vmem>>, vector<4x8x1xf32>
      tpu.vector_store %arg10[%c0_40, %c0_41, %c0_42], %38 {strides = array<i32>} : memref<4x8x1xf32, #tpu.memory_space<vmem>>, vector<4x8x1xf32>,
      %cst_43 = arith.constant 0.000000e+00 : f32
      %40 = vector.broadcast %cst_43 : f32 to vector<4x8x8xf32>
      %c0_44 = arith.constant 0 : index
      %c0_45 = arith.constant 0 : index
      %c0_46 = arith.constant 0 : index
      %41 = vector.load %arg11[%c0_44, %c0_45, %c0_46] : memref<4x8x8xf32, #tpu.memory_space<vmem>>, vector<4x8x8xf32>
      tpu.vector_store %arg11[%c0_44, %c0_45, %c0_46], %40 {strides = array<i32>} : memref<4x8x8xf32, #tpu.memory_space<vmem>>, vector<4x8x8xf32>,
    } else {
    }
    %c0 = arith.constant 0 : index
    %c0_1 = arith.constant 0 : index
    %c0_2 = arith.constant 0 : index
    %c0_3 = arith.constant 0 : index
    %3 = vector.load %arg3[%c0, %c0_1, %c0_2, %c0_3] : memref<1x4x8x8xbf16, #tpu.memory_space<vmem>>, vector<1x4x8x8xbf16>
    %4 = vector.shape_cast %3 : vector<1x4x8x8xbf16> to vector<4x8x8xbf16>
    %c0_4 = arith.constant 0 : index
    %c0_5 = arith.constant 0 : index
    %c0_6 = arith.constant 0 : index
    %c0_7 = arith.constant 0 : index
    %5 = vector.load %arg4[%c0_4, %c0_5, %c0_6, %c0_7] : memref<1x4x8x8xbf16, #tpu.memory_space<vmem>>, vector<1x4x8x8xbf16>
    %6 = vector.shape_cast %5 : vector<1x4x8x8xbf16> to vector<4x8x8xbf16>
    %c0_8 = arith.constant 0 : index
    %c0_9 = arith.constant 0 : index
    %c0_10 = arith.constant 0 : index
    %c0_11 = arith.constant 0 : index
    %7 = vector.load %arg5[%c0_8, %c0_9, %c0_10, %c0_11] : memref<1x4x8x8xbf16, #tpu.memory_space<vmem>>, vector<1x4x8x8xbf16>
    %8 = vector.shape_cast %7 : vector<1x4x8x8xbf16> to vector<4x8x8xbf16>
    "tpu.trace_start"() <{level = 10 : i32, message = "hqd,hkd->hqk"}> : () -> ()
    %cst = arith.constant dense<0.000000e+00> : vector<4x8x8xf32>
    %9 = tpu.matmul %4, %6, %cst {dimension_numbers = #tpu.dot_dimension_numbers<[2], [2], [1], [1], [0, 0, 0, 1, 1, 1], [0], [0]>} : vector<4x8x8xbf16>, vector<4x8x8xbf16>, vector<4x8x8xf32> -> vector<4x8x8xf32>
    "tpu.trace_stop"() : () -> ()
    %c0_12 = arith.constant 0 : index
    %c0_13 = arith.constant 0 : index
    %c0_14 = arith.constant 0 : index
    %10 = vector.load %arg9[%c0_12, %c0_13, %c0_14] : memref<4x8x1xf32, #tpu.memory_space<vmem>>, vector<4x8x1xf32>
    %cst_15 = arith.constant dense<0xFF800000> : vector<4x8xf32>
    %11 = vector.multi_reduction <maximumf>, %9, %cst_15 [2] : vector<4x8x8xf32> to vector<4x8xf32>
    %12 = vector.shape_cast %11 : vector<4x8xf32> to vector<4x8x1xf32>
    %13 = arith.maximumf %10, %12 : vector<4x8x1xf32>
    %14 = arith.subf %10, %13 : vector<4x8x1xf32>
    %15 = math.exp %14 : vector<4x8x1xf32>
    %16 = vector.broadcast %13 : vector<4x8x1xf32> to vector<4x8x8xf32>
    %17 = arith.subf %9, %16 : vector<4x8x8xf32>
    %18 = math.exp %17 : vector<4x8x8xf32>
    %c0_16 = arith.constant 0 : index
    %c0_17 = arith.constant 0 : index
    %c0_18 = arith.constant 0 : index
    %19 = vector.load %arg10[%c0_16, %c0_17, %c0_18] : memref<4x8x1xf32, #tpu.memory_space<vmem>>, vector<4x8x1xf32>
    %20 = arith.mulf %15, %19 : vector<4x8x1xf32>
    %cst_19 = arith.constant dense<0.000000e+00> : vector<4x8xf32>
    %21 = vector.multi_reduction <add>, %18, %cst_19 [2] : vector<4x8x8xf32> to vector<4x8xf32>
    %22 = vector.shape_cast %21 : vector<4x8xf32> to vector<4x8x1xf32>
    %23 = arith.addf %20, %22 : vector<4x8x1xf32>
    %c0_20 = arith.constant 0 : index
    %c0_21 = arith.constant 0 : index
    %c0_22 = arith.constant 0 : index
    %24 = vector.load %arg10[%c0_20, %c0_21, %c0_22] : memref<4x8x1xf32, #tpu.memory_space<vmem>>, vector<4x8x1xf32>
    tpu.vector_store %arg10[%c0_20, %c0_21, %c0_22], %23 {strides = array<i32>} : memref<4x8x1xf32, #tpu.memory_space<vmem>>, vector<4x8x1xf32>,
    %c0_23 = arith.constant 0 : index
    %c0_24 = arith.constant 0 : index
    %c0_25 = arith.constant 0 : index
    %25 = vector.load %arg11[%c0_23, %c0_24, %c0_25] : memref<4x8x8xf32, #tpu.memory_space<vmem>>, vector<4x8x8xf32>
    %26 = vector.broadcast %15 : vector<4x8x1xf32> to vector<4x8x8xf32>
    %27 = arith.mulf %26, %25 : vector<4x8x8xf32>
    %28 = arith.truncf %18 : vector<4x8x8xf32> to vector<4x8x8xbf16>
    "tpu.trace_start"() <{level = 10 : i32, message = "hqk,hkd->hqd"}> : () -> ()
    %cst_26 = arith.constant dense<0.000000e+00> : vector<4x8x8xf32>
    %29 = tpu.matmul %28, %8, %cst_26 {dimension_numbers = #tpu.dot_dimension_numbers<[2], [1], [1], [2], [0, 0, 0, 1, 1, 2], [0], [0]>} : vector<4x8x8xbf16>, vector<4x8x8xbf16>, vector<4x8x8xf32> -> vector<4x8x8xf32>
    "tpu.trace_stop"() : () -> ()
    %30 = arith.addf %27, %29 : vector<4x8x8xf32>
    %c0_27 = arith.constant 0 : index
    %c0_28 = arith.constant 0 : index
    %c0_29 = arith.constant 0 : index
    %31 = vector.load %arg11[%c0_27, %c0_28, %c0_29] : memref<4x8x8xf32, #tpu.memory_space<vmem>>, vector<4x8x8xf32>
    tpu.vector_store %arg11[%c0_27, %c0_28, %c0_29], %30 {strides = array<i32>} : memref<4x8x8xf32, #tpu.memory_space<vmem>>, vector<4x8x8xf32>,
    %c0_30 = arith.constant 0 : index
    %c0_31 = arith.constant 0 : index
    %c0_32 = arith.constant 0 : index
    %32 = vector.load %arg9[%c0_30, %c0_31, %c0_32] : memref<4x8x1xf32, #tpu.memory_space<vmem>>, vector<4x8x1xf32>
    tpu.vector_store %arg9[%c0_30, %c0_31, %c0_32], %13 {strides = array<i32>} : memref<4x8x1xf32, #tpu.memory_space<vmem>>, vector<4x8x1xf32>,
    %c0_i32_33 = arith.constant 0 : i32
    %33 = arith.cmpi eq, %arg2, %c0_i32_33 : i32
    %34 = arith.extui %33 : i1 to i32
    %c0_i32_34 = arith.constant 0 : i32
    %35 = arith.cmpi ne, %34, %c0_i32_34 : i32
    scf.if %35 {
      %c0_35 = arith.constant 0 : index
      %c0_36 = arith.constant 0 : index
      %c0_37 = arith.constant 0 : index
      %36 = vector.load %arg11[%c0_35, %c0_36, %c0_37] : memref<4x8x8xf32, #tpu.memory_space<vmem>>, vector<4x8x8xf32>
      %c0_38 = arith.constant 0 : index
      %c0_39 = arith.constant 0 : index
      %c0_40 = arith.constant 0 : index
      %37 = vector.load %arg10[%c0_38, %c0_39, %c0_40] : memref<4x8x1xf32, #tpu.memory_space<vmem>>, vector<4x8x1xf32>
      %38 = tpu.reciprocal %37 {approx = true} : vector<4x8x1xf32> -> vector<4x8x1xf32>
      %39 = vector.broadcast %38 : vector<4x8x1xf32> to vector<4x8x8xf32>
      %40 = arith.mulf %36, %39 : vector<4x8x8xf32>
      %41 = tpu.transpose %40, [1, 0, 2] : vector<4x8x8xf32> -> vector<8x4x8xf32>
      %42 = vector.shape_cast %41 : vector<8x4x8xf32> to vector<8x32xf32>
      %43 = arith.truncf %42 : vector<8x32xf32> to vector<8x32xbf16>
      %c0_41 = arith.constant 0 : index
      %c0_42 = arith.constant 0 : index
      %44 = vector.load %arg6[%c0_41, %c0_42] : memref<32x32xbf16, #tpu.memory_space<vmem>>, vector<32x32xbf16>
      %cst_43 = arith.constant dense<0.000000e+00> : vector<8x32xf32>
      %45 = tpu.matmul %43, %44, %cst_43 {dimension_numbers = #tpu.dot_dimension_numbers<[1], [0], [0], [1], [0, 0, 1, 1], [], []>} : vector<8x32xbf16>, vector<32x32xbf16>, vector<8x32xf32> -> vector<8x32xf32>
      %c0_44 = arith.constant 0 : index
      %c0_45 = arith.constant 0 : index
      %46 = vector.load %arg7[%c0_44, %c0_45] : memref<1x32xf32, #tpu.memory_space<vmem>>, vector<1x32xf32>
      %47 = vector.broadcast %46 : vector<1x32xf32> to vector<8x32xf32>
      %48 = arith.addf %45, %47 : vector<8x32xf32>
      %c0_46 = arith.constant 0 : index
      %c0_47 = arith.constant 0 : index
      %c0_48 = arith.constant 0 : index
      %49 = vector.load %arg8[%c0_46, %c0_47, %c0_48] : memref<1x8x32xf32, #tpu.memory_space<vmem>>, vector<1x8x32xf32>
      %50 = vector.shape_cast %49 : vector<1x8x32xf32> to vector<8x32xf32>
      %51 = vector.shape_cast %48 : vector<8x32xf32> to vector<1x8x32xf32>
      tpu.vector_store %arg8[%c0_46, %c0_47, %c0_48], %51 {strides = array<i32>} : memref<1x8x32xf32, #tpu.memory_space<vmem>>, vector<1x8x32xf32>,
    } else {
    }
    return
  }
  func.func @transform_0(%arg0: i32, %arg1: i32, %arg2: i32) -> (i32, i32, i32, i32) {
    %c0_i32 = arith.constant 0 : i32
    %c0_i32_0 = arith.constant 0 : i32
    %c0_i32_1 = arith.constant 0 : i32
    return %arg0, %c0_i32, %arg1, %c0_i32_0 : i32, i32, i32, i32
  }
  func.func @transform_1(%arg0: i32, %arg1: i32, %arg2: i32) -> (i32, i32, i32, i32) {
    %c0_i32 = arith.constant 0 : i32
    %c0_i32_0 = arith.constant 0 : i32
    %c0_i32_1 = arith.constant 0 : i32
    return %arg0, %c0_i32, %arg2, %c0_i32_0 : i32, i32, i32, i32
  }
  func.func @transform_2(%arg0: i32, %arg1: i32, %arg2: i32) -> (i32, i32, i32, i32) {
    %c0_i32 = arith.constant 0 : i32
    %c0_i32_0 = arith.constant 0 : i32
    %c0_i32_1 = arith.constant 0 : i32
    return %arg0, %c0_i32, %arg2, %c0_i32_0 : i32, i32, i32, i32
  }
  func.func @transform_3(%arg0: i32, %arg1: i32, %arg2: i32) -> (i32, i32) {
    %c0_i32 = arith.constant 0 : i32
    %c0_i32_0 = arith.constant 0 : i32
    %c0_i32_1 = arith.constant 0 : i32
    return %c0_i32, %c0_i32_0 : i32, i32
  }
  func.func @transform_4(%arg0: i32, %arg1: i32, %arg2: i32) -> (i32, i32) {
    %c0_i32 = arith.constant 0 : i32
    %c0_i32_0 = arith.constant 0 : i32
    %c0_i32_1 = arith.constant 0 : i32
    return %c0_i32, %c0_i32_0 : i32, i32
  }
  func.func @transform_5(%arg0: i32, %arg1: i32, %arg2: i32) -> (i32, i32, i32) {
    %c0_i32 = arith.constant 0 : i32
    %c0_i32_0 = arith.constant 0 : i32
    return %arg0, %arg1, %c0_i32 : i32, i32, i32
  }
}

</mosaic_0001>

<bundles_post_ra>
// kernel: attention_pallas.2
= control target key start
LH: loop header
LB: loop body
LE: loop exit
PB: predicated region body
PF: predicated region fallthrough
CT: control target
= control target key end

     0   :  { %vm44_vm0 = vcmask 261120   ;;  %vm64_vm1 = vcmask 257024   ;;  %s265_s1 = inlined_call_operand.vmem [shape: bf16[32,32], index: 1, kind: input, shape index: {}]   ;;  %s266_s2 = inlined_call_operand.vmem [shape: bf16[32,32], index: 2, kind: input, shape index: {}]   ;;  %s267_s3 = inlined_call_operand.vmem [shape: bf16[32,32], index: 3, kind: input, shape index: {}]   ;;  %s268_s0 = inlined_call_operand.vmem [shape: bf16[16,32], index: 0, kind: input, shape index: {}]   ;;  %s269_s4 = inlined_call_operand.vmem [shape: bf16[16,32], index: 4, kind: output, shape index: {0}]   ;;  %s270_s5 = inlined_call_operand.vmem [shape: bf16[16,32], index: 5, kind: output, shape index: {1}]   ;;  %s271_s6 = inlined_call_operand.vmem [shape: bf16[16,32], index: 6, kind: output, shape index: {2}]  }
   0x1   :  { %v180_v0 = vld [vmem:[%s265_s1 + $0x8] sm:$0xff]  ;;  %v179_v3 = vld [vmem:[%s265_s1] sm:$0xff] }
   0x2   :  { %v182_v1 = vld [vmem:[%s266_s2 + $0x8] sm:$0xff]  ;;  %54 = vmatpush.bf16.msra.mxu0 %v180_v0  ;;  %v181_v4 = vld [vmem:[%s266_s2] sm:$0xff] }
   0x3   :  { %v184_v2 = vld [vmem:[%s267_s3 + $0x8] sm:$0xff]  ;;  %89 = vmatpush.bf16.msra.mxu1 %v182_v1  ;;  %v183_v5 = vld [vmem:[%s267_s3] sm:$0xff] }
   0x4   :  { %123 = vmatpush.bf16.msra.mxu2 %v184_v2  ;;  %v178_v6 = vld [vmem:[%s268_s0] sm:$0xff] }
   0x6   :  { %55 = vmatpush.bf16.msra.mxu0 %v179_v3 }
   0x7   :  { %90 = vmatpush.bf16.msra.mxu1 %v181_v4 }
   0x8   :  { %124 = vmatpush.bf16.msra.mxu2 %v183_v5 }
   0x9   :  { %159 = vmatmul.msk.bf16.vlgmr.msra.gmra.mxu0 %vm44_vm0, %v178_v6 }
   0xa   :  { %168 = vmatmul.msk.bf16.vlgmr.msra.gmra.mxu1 %vm44_vm0, %v178_v6 }
   0xb   :  { %177 = vmatmul.msk.bf16.vlgmr.msra.gmra.mxu2 %vm44_vm0, %v178_v6 }
  0x86   :  { %v57_v7 = vpop.f32.mrf.mxu0 }
  0x87   :  { %v92_v8 = vpop.f32.mrf.mxu1  ;;  %v62_v9 = vpack.c.bf16 %v57_v7, %v57_v7 }
  0x88   :  { %v97_v10 = vpack.c.bf16 %v92_v8, %v92_v8 }
  0x89   :  { %65 = vst.msk [vmem:[%s269_s4] sm:$0xf] %vm64_vm1, %v62_v9 }
  0x8a   :  { %99 = vst.msk [vmem:[%s270_s5] sm:$0xf] %vm64_vm1, %v97_v10 }
  0x8e   :  { %v126_v11 = vpop.f32.mrf.mxu2  ;;  %v59_v13 = vpop.f32.mrf.mxu0 }
  0x8f   :  { %v131_v12 = vpack.c.bf16 %v126_v11, %v126_v11  ;;  %v94_v14 = vpop.f32.mrf.mxu1  ;;  %v63_v15 = vpack.c.bf16 %v59_v13, %v59_v13 }
  0x90   :  { %v98_v16 = vpack.c.bf16 %v94_v14, %v94_v14 }
  0x91   :  { %133 = vst.msk [vmem:[%s271_s6] sm:$0xf] %vm64_vm1, %v131_v12 }
  0x92   :  { %66 = vst.msk [vmem:[%s269_s4 + $0x4] sm:$0xf] %vm64_vm1, %v63_v15 }
  0x93   :  { %100 = vst.msk [vmem:[%s270_s5 + $0x4] sm:$0xf] %vm64_vm1, %v98_v16 }
  0x96   :  { %v128_v17 = vpop.f32.mrf.mxu2 }
  0x97   :  { %v132_v18 = vpack.c.bf16 %v128_v17, %v128_v17 }
  0x99   :  { %134 = vst.msk [vmem:[%s271_s6 + $0x4] sm:$0xf] %vm64_vm1, %v132_v18 }

// kernel: attention_pallas.3
= control target key start
LH: loop header
LB: loop body
LE: loop exit
PB: predicated region body
PF: predicated region fallthrough
CT: control target
= control target key end

     0   :  { %10 = vsyncpa [#allocation6], 0  ;;  %s1460_s0 = inlined_call_operand.vmem [shape: bf16[2,4,8,8], index: 0, kind: input, shape index: {}]   ;;  %s1461_s1 = inlined_call_operand.vmem [shape: bf16[2,4,8,8], index: 1, kind: input, shape index: {}]   ;;  %s1462_s2 = inlined_call_operand.vmem [shape: bf16[2,4,8,8], index: 2, kind: input, shape index: {}]   ;;  %s1463_s3 = inlined_call_operand.vmem [shape: bf16[32,32], index: 3, kind: input, shape index: {}]   ;;  %s1464_s4 = inlined_call_operand.vmem [shape: f32[1,32], index: 4, kind: input, shape index: {}]   ;;  %s1465_s5 = inlined_call_operand.hbm [shape: f32[2,8,32], index: 5, kind: output, shape index: {}]  }
   0x1   :  { %12 = vsyncpa [#allocation6 + $0x1], 0  ;;  %s1222_s18 = smov 0   ;;  %s1224_s19 = smov 0  }
   0x2   :  { %s1226_s20 = smov 0   ;;  %s1228_s21 = smov 0  }
   0x3   :  { %s1230_s22 = smov 0   ;;  %s1232_s23 = smov 0  }
   0x4 LB: > { %s975_s24 = sadd.s32 4294967295, %s1182_s23   ;;  %s976_s25 = sadd.s32 4294967294, %s1182_s23   ;;  %s1182_s23 = sphi %s1232_s23, %s18_s23   ;;  %s1178_s22 = sphi %s1230_s22, %s1472_s22   ;;  %s1174_s21 = sphi %s1228_s21, %s1471_s21   ;;  %s1170_s20 = sphi %s1226_s20, %s1470_s20   ;;  %s1166_s19 = sphi %s1224_s19, %s1469_s19   ;;  %s1162_s18 = sphi %s1222_s18, %s1468_s18  }
   0x5   : > { %s37_s26 = sadd.s32 1, %s1178_s22  ;;  %s172_s27 = sadd.s32 1, %s1170_s20 }
   0x6   : > { %p39_p0 = scmp.ge.s32.totalorder %s37_s26, 2  ;;  %p182_p1 = scmp.ne.s32.totalorder %s1170_s20, %s1166_s19 }
   0x7   : > { %p183_p2 = scmp.eq.s32.totalorder %s975_s24, 1  ;;  %p188_p3 = scmp.ne.s32.totalorder %s1166_s19, %s1162_s18 }
   0x8   : > { %s1474_s26 = smov (%p39_p0, %s37_s26), 0  ;;  %p189_p5 = scmp.eq.s32.totalorder %s976_s25, 1 }
   0x9   : > { %p1262_p4 = por %p183_p2, %p182_p1  ;;  %s167_s29 = ssub.s32 %s1178_s22, %s1474_s26 }
   0xa   : > { %p979_p6 = scmp.ge.s32.totalorder %s1182_s23, 1  ;;  %p170_p7 = scmp.eq.s32.totalorder %s167_s29, 0 }
   0xb   : > { %p1269_p8 = por %p189_p5, %p188_p3  ;;  %p246_p9 = scmp.lt.s32.totalorder %s1182_s23, 3 }
   0xc   : > { %s1275_s6 = scalar_select %p170_p7, %s1170_s20, %s172_s27  }
   0xd   : > { %p247_p10 = pnand %p979_p6, %p246_p9 }
   0xe   : > { %p293_p11 = scmp.lt.s32.totalorder (!%p247_p10), %s1174_s21, 1  ;;  %s1189_s24 = smov (!%p247_p10), 16  }
   0xf   : > { %250 = sbr.rel (%p247_p10) target bundleno = 923 (0x39b), region = 40  ;;  %s1190_s25 = smov (!%p247_p10), 24  }
  0x10   : > { %s1191_s27 = smov (!%p247_p10), 8   ;;  %s290_s10 = sand.u32 (!%p247_p10), 1, %s1166_s19  }
  0x11   : > { %s980_s12 = sshll.u32 (!%p247_p10), %s290_s10, 3  ;;  %s846_s29 = scalar_lea.sflag (!%p247_p10), [#allocation6], %s290_s10 }
  0x14   : > { %s294_s7 = scalar_select %p293_p11, %s1174_s21, 1  ;;  %vm331_vm0 = vcmask 64512   ;;  %vm322_vm1 = vcmask 7168   ;;  %v1184_v12 = vmov -inf   ;;  %v1185_v25 = vmov 0  }
  0x15   : > { %323 = vst.msk [vmem:[#allocation2] sm:$0xff] %vm322_vm1, %v1184_v12  ;;  %1077 = vset.pattern.permute.xlu0 %v1185_v25  ;;  %1076 = vset.pattern.permute.xlu2 %v1185_v25  ;;  %v1186_v26 = vmov 0.0   ;;  %vm553_vm2 = vcmask 1043456   ;;  %vm679_vm3 = vcmask 1047556   ;;  %vm802_vm4 = vcmask 130048  }
  0x16   : > { %s1279_s8 = sshll.u32 %s294_s7, 4  ;;  %324 = vst.msk [vmem:[#allocation2 + $0x8] sm:$0xff] %vm322_vm1, %v1184_v12  ;;  %1078 = vset.pattern.permute.xlu1 %v1185_v25  ;;  %vm804_vm5 = vcmask 195584   ;;  %vm827_vm6 = vcmask 261120  }
  0x17   : > { %s308_s11 = scalar_lea.vmem %s1461_s1, %s1279_s8  ;;  %s300_s14 = scalar_lea.vmem %s1460_s0, %s1279_s8  ;;  %325 = vst.msk [vmem:[#allocation2 + $0x10] sm:$0xff] %vm322_vm1, %v1184_v12 }
  0x18   : > { %v340_v0 = vld [vmem:[%s308_s11] sm:$0xf]  ;;  %v342_v1 = vld [vmem:[%s308_s11 + $0x8] sm:$0xf]  ;;  %v343_v2 = vld [vmem:[%s308_s11 + $0xc] sm:$0xf]  ;;  %s316_s17 = scalar_lea.vmem %s1462_s2, %s1279_s8 }
  0x19   : > { %v353_v3 = vsel %vm331_vm0, %v340_v0, 0  ;;  %v391_v4 = vsel %vm331_vm0, %v342_v1, 0  ;;  %v410_v5 = vsel %vm331_vm0, %v343_v2, 0  ;;  %v341_v6 = vld [vmem:[%s308_s11 + $0x4] sm:$0xf]  ;;  %326 = vst.msk [vmem:[#allocation2 + $0x18] sm:$0xff] %vm322_vm1, %v1184_v12 }
  0x1a   : > { %362 = vmatpush.bf16.xpose.msra.mxu0 %v353_v3  ;;  %400 = vmatpush.bf16.xpose.msra.mxu2 %v391_v4  ;;  %v372_v7 = vsel %vm331_vm0, %v341_v6, 0  ;;  %v336_v8 = vld [vmem:[%s300_s14] sm:$0xf]  ;;  %v338_v9 = vld [vmem:[%s300_s14 + $0x8] sm:$0xf]  ;;  %329 = vst.msk [vmem:[#allocation3 + $0x10] sm:$0xff] %vm322_vm1, %v1186_v26 }
  0x1b   : > { %419 = vmatpush.bf16.xpose.msra.mxu3 %v410_v5  ;;  %381 = vmatpush.bf16.xpose.msra.mxu1 %v372_v7  ;;  %v339_v10 = vld [vmem:[%s300_s14 + $0xc] sm:$0xf]  ;;  %v337_v11 = vld [vmem:[%s300_s14 + $0x4] sm:$0xf]  ;;  %327 = vst.msk [vmem:[#allocation3] sm:$0xff] %vm322_vm1, %v1186_v26  ;;  %s1005_s11 = sshll.u32 %s1174_s21, 3 }
  0x1c   : > { %328 = vst.msk [vmem:[#allocation3 + $0x8] sm:$0xff] %vm322_vm1, %v1186_v26  ;;  %v1325_v27 = vld [vmem:[#allocation2] sm:$0xff]  ;;  %v346_v43 = vld [vmem:[%s316_s17 + $0x8] sm:$0xf]  ;;  %v347_v45 = vld [vmem:[%s316_s17 + $0xc] sm:$0xf]  ;;  %s857_s15 = scalar_lea.hbm %s1465_s5, %s1005_s11 }
  0x1d   : > { %330 = vst.msk [vmem:[#allocation3 + $0x18] sm:$0xff] %vm322_vm1, %v1186_v26  ;;  %v1337_v33 = vld [vmem:[#allocation2 + $0x8] sm:$0xff]  ;;  %v593_v44 = vsel %vm553_vm2, %v346_v43, 0  ;;  %v612_v46 = vsel %vm553_vm2, %v347_v45, 0  ;;  %v344_v47 = vld [vmem:[%s316_s17] sm:$0xf] }
  0x1e   : > { %332 = vst.msk [vmem:[#allocation4] sm:$0xff] %vm331_vm0, %v1186_v26  ;;  %v1335_v31 = vld [vmem:[#allocation2 + $0x10] sm:$0xff]  ;;  %v555_v48 = vsel %vm553_vm2, %v344_v47, 0  ;;  %v345_v50 = vld [vmem:[%s316_s17 + $0x4] sm:$0xf]  ;;  %s1124_s11 = scalar_lea.hbm %s1465_s5, 16 }
  0x1f   : > { %333 = vst.msk [vmem:[#allocation4 + $0x8] sm:$0xff] %vm331_vm0, %v1186_v26  ;;  %v574_v52 = vsel %vm553_vm2, %v345_v50, 0 }
  0x20   : > { %334 = vst.msk [vmem:[#allocation4 + $0x10] sm:$0xff] %vm331_vm0, %v1186_v26  ;;  %v428_v39 = vld [vmem:[#allocation2 + $0x18] sm:$0xff] }
  0x21   : > { %987 = vmatmul.msk.bf16.vlgmr.msra.gmra.mxu0 %vm331_vm0, %v336_v8  ;;  %989 = vmatmul.msk.bf16.vlgmr.msra.gmra.mxu2 %vm331_vm0, %v338_v9  ;;  %335 = vst.msk [vmem:[#allocation4 + $0x18] sm:$0xff] %vm331_vm0, %v1186_v26 }
  0x22   : > { %990 = vmatmul.msk.bf16.vlgmr.msra.gmra.mxu3 %vm331_vm0, %v339_v10  ;;  %988 = vmatmul.msk.bf16.vlgmr.msra.gmra.mxu1 %vm331_vm0, %v337_v11 }
  0x23   : > { %602 = vmatpush.bf16.msrb.mxu2 %v593_v44  ;;  %621 = vmatpush.bf16.msrb.mxu3 %v612_v46 }
  0x24   : > { %564 = vmatpush.bf16.msrb.mxu0 %v555_v48  ;;  %583 = vmatpush.bf16.msrb.mxu1 %v574_v52 }
  0x27   : > { %v520_v44 = vld [vmem:[#allocation4 + $0x10] sm:$0xff] }
  0x9e   : > { %v1301_v13 = vpop.f32.mrf.mxu0 }
  0x9f   : > { %v429_v14 = vsel %vm331_vm0, %v1301_v13, -inf  ;;  %v1305_v15 = vpop.f32.mrf.mxu1 }
  0xa0   : > { %430 = vmax.xlane.f32.xlu1 %v429_v14  ;;  %v432_v19 = vsel %vm331_vm0, %v1305_v15, -inf }
  0xa4   : > { %v1307_v16 = vpop.f32.mrf.mxu2 }
  0xa5   : > { %v1309_v17 = vpop.f32.mrf.mxu3  ;;  %v435_v18 = vsel %vm331_vm0, %v1307_v16, -inf }
  0xa6   : > { %436 = vmax.xlane.f32.xlu0 %v435_v18  ;;  %v366_v20 = vpop.f32.mrf.mxu0  ;;  %v438_v22 = vsel %vm331_vm0, %v1309_v17, -inf }
  0xa7   : > { %v385_v21 = vpop.f32.mrf.mxu1 }
  0xa8   : > { %433 = vmax.xlane.f32.xlu1 %v432_v19  ;;  %v491_v19 = vld [vmem:[#allocation3 + $0x10] sm:$0xff] }
  0xac   : > { %v404_v23 = vpop.f32.mrf.mxu2 }
  0xad   : > { %v423_v24 = vpop.f32.mrf.mxu3  ;;  %v492_v23 = vld [vmem:[#allocation3 + $0x18] sm:$0xff] }
  0xae   : > { %439 = vmax.xlane.f32.xlu0 %v438_v22 }
 0x113   : > { %v431_v28 = vpop.xlane.xlu1 %430 }
 0x114   : > { %v1328_v29 = vmax.f32 %v1325_v27, %v431_v28  ;;  %v489_v28 = vld [vmem:[#allocation3] sm:$0xff] }
 0x116   : > { %v445_v30 = vsub.f32 %v1325_v27, %v1328_v29  ;;  %635 = vst.msk [vmem:[#allocation2] sm:$0xff] %vm322_vm1, %v1328_v29  ;;  %459 = vperm.xlu0 %1077, %v1328_v29  }
 0x118   : > { %v449_v11 = vmul.f32 1.442695, %v445_v30 }
 0x119   : > { %v437_v32 = vpop.xlane.xlu0 %436 }
 0x11a   : > { %v1340_v34 = vmax.f32 %v1335_v31, %v437_v32 }
 0x11b   : > { %v434_v35 = vpop.xlane.xlu1 %433 }
 0x11c   : > { %v447_v36 = vsub.f32 %v1335_v31, %v1340_v34  ;;  %637 = vst.msk [vmem:[#allocation2 + $0x10] sm:$0xff] %vm322_vm1, %v1340_v34  ;;  %v1347_v37 = vmax.f32 %v1337_v33, %v434_v35  ;;  %469 = vperm.xlu2 %1076, %v1340_v34   ;;  %v490_v35 = vld [vmem:[#allocation3 + $0x8] sm:$0xff] }
 0x11e   : > { %v446_v38 = vsub.f32 %v1337_v33, %v1347_v37  ;;  %636 = vst.msk [vmem:[#allocation2 + $0x8] sm:$0xff] %vm322_vm1, %v1347_v37  ;;  %464 = vperm.xlu1 %1078, %v1347_v37   ;;  %v453_v12 = vmul.f32 1.442695, %v447_v36 }
 0x121   : > { %v440_v40 = vpop.xlane.xlu0 %439 }
 0x122   : > { %v444_v41 = vmax.f32 %v428_v39, %v440_v40 }
 0x124   : > { %v448_v42 = vsub.f32 %v428_v39, %v444_v41  ;;  %638 = vst.msk [vmem:[#allocation2 + $0x18] sm:$0xff] %vm322_vm1, %v444_v41  ;;  %474 = vperm.xlu2 %1076, %v444_v41  }
 0x126   : > { %v455_v14 = vmul.f32 1.442695, %v448_v42 }
 0x176   : > { %v470_v49 = vpop.permute.xlu2 %469 }
 0x177   : > { %v479_v51 = vsub.f32 %v1307_v16, %v470_v49  ;;  %v451_v16 = vmul.f32 1.442695, %v446_v38 }
 0x179   : > { %v485_v53 = vmul.f32 1.442695, %v479_v51 }
 0x17b   : > { %1080 = vpow2.f32 %v485_v53  ;;  %v521_v53 = vld [vmem:[#allocation4 + $0x18] sm:$0xff] }
 0x17e   : > { %v475_v54 = vpop.permute.xlu2 %474 }
 0x17f   : > { %v480_v55 = vsub.f32 %v1309_v17, %v475_v54  ;;  %v518_v54 = vld [vmem:[#allocation4] sm:$0xff] }
 0x181   : > { %v1081_v56 = vpop.eup %1080  ;;  %v487_v57 = vmul.f32 1.442695, %v480_v55 }
 0x182   : > { %v503_v58 = vsel %vm331_vm0, %v1081_v56, 0.0  ;;  %v548_v59 = vpack.c.bf16 %v1081_v56, %v1081_v56 }
 0x183   : > { %1082 = vpow2.f32 %v487_v57  ;;  %504 = vadd.xlane.f32.xlu2 %v503_v58 }
 0x184   : > { %993 = vmatmul.msk.bf16.vlgmr.msrb.gmra.mxu2 %vm331_vm0, %v548_v59 }
 0x188   : > { %v460_v60 = vpop.permute.xlu0 %459 }
 0x189   : > { %v1083_v61 = vpop.eup %1082  ;;  %v477_v62 = vsub.f32 %v1301_v13, %v460_v60 }
 0x18a   : > { %v506_v63 = vsel %vm331_vm0, %v1083_v61, 0.0  ;;  %v549_v0 = vpack.c.bf16 %v1083_v61, %v1083_v61 }
 0x18b   : > { %v481_v1 = vmul.f32 1.442695, %v477_v62  ;;  %507 = vadd.xlane.f32.xlu0 %v506_v63  ;;  %v519_v63 = vld [vmem:[#allocation4 + $0x8] sm:$0xff] }
 0x18c   : > { %994 = vmatmul.msk.bf16.vlgmr.msrb.gmra.mxu3 %vm331_vm0, %v549_v0 }
 0x18d   : > { %1084 = vpow2.f32 %v481_v1 }
 0x190   : > { %v465_v2 = vpop.permute.xlu1 %464 }
 0x191   : > { %v478_v3 = vsub.f32 %v1305_v15, %v465_v2 }
 0x193   : > { %v1085_v4 = vpop.eup %1084  ;;  %v483_v5 = vmul.f32 1.442695, %v478_v3 }
 0x194   : > { %v497_v6 = vsel %vm331_vm0, %v1085_v4, 0.0  ;;  %v546_v7 = vpack.c.bf16 %v1085_v4, %v1085_v4 }
 0x195   : > { %1086 = vpow2.f32 %v483_v5  ;;  %498 = vadd.xlane.f32.xlu1 %v497_v6  ;;  %v1187_v6 = vmov 1983009808  }
 0x196   : > { %991 = vmatmul.msk.bf16.vlgmr.msrb.gmra.mxu0 %vm331_vm0, %v546_v7  ;;  %1088 = vpow2.f32 %v449_v11  ;;  %v684_v7 = vunpack.c.l.s4 %v1187_v6 }
 0x197   : > { %1090 = vpow2.f32 %v453_v12 }
 0x198   : > { %1092 = vpow2.f32 %v455_v14  ;;  %v685_v14 = vunpack.c.0.s8 %v684_v7 }
 0x199   : > { %1094 = vpow2.f32 %v451_v16 }
 0x19b   : > { %v1087_v8 = vpop.eup %1086 }
 0x19c   : > { %v500_v9 = vsel %vm331_vm0, %v1087_v8, 0.0  ;;  %v547_v10 = vpack.c.bf16 %v1087_v8, %v1087_v8  ;;  %v1089_v13 = vpop.eup %1088 }
 0x19d   : > { %501 = vadd.xlane.f32.xlu2 %v500_v9  ;;  %v1091_v15 = vpop.eup %1090  ;;  %v493_v31 = vmul.f32 %v1089_v13, %v489_v28 }
 0x19e   : > { %992 = vmatmul.msk.bf16.vlgmr.msrb.gmra.mxu1 %vm331_vm0, %v547_v10  ;;  %v1093_v17 = vpop.eup %1092  ;;  %v495_v20 = vmul.f32 %v1091_v15, %v491_v19  ;;  %v1188_v19 = vmov 1934713408  }
 0x19f   : > { %v1095_v18 = vpop.eup %1094  ;;  %v496_v24 = vmul.f32 %v1093_v17, %v492_v23 }
 0x1a0   : > { %v494_v39 = vmul.f32 %v1095_v18, %v490_v35 }
 0x1ae   : > { %524 = vperm.xlu1 %1078, %v1089_v13  }
 0x1b5   : > { %534 = vperm.xlu2 %1076, %v1091_v15  }
 0x1bd   : > { %539 = vperm.xlu2 %1076, %v1093_v17  }
 0x1c5   : > { %529 = vperm.xlu2 %1076, %v1095_v18  }
 0x1f6   : > { %v505_v21 = vpop.xlane.xlu2 %504 }
 0x1f7   : > { %v511_v22 = vadd.f32 %v505_v21, %v495_v20  ;;  %v708_v20 = vunpack.c.l.s4 %v1188_v19  ;;  %v1012_v19 = vld [vmem:[%s1463_s3 + $0x8] sm:$0xff] }
 0x1f8   : > { %837 = vmatpush.bf16.msra.mxu0 %v1012_v19 }
 0x1f9   : > { %516 = vst.msk [vmem:[#allocation3 + $0x10] sm:$0xff] %vm322_vm1, %v511_v22 }
 0x1fe   : > { %v508_v25 = vpop.xlane.xlu0 %507 }
 0x1ff   : > { %v512_v26 = vadd.f32 %v508_v25, %v496_v24 }
 0x200   : > { %v648_v27 = vld [vmem:[#allocation3 + $0x10] sm:$0xff] }
 0x201   : > { %517 = vst.msk [vmem:[#allocation3 + $0x18] sm:$0xff] %vm322_vm1, %v512_v26  ;;  %1096 = vrcp.f32 %v648_v27  ;;  %v709_v27 = vunpack.c.0.s8 %v708_v20  ;;  %v1011_v20 = vld [vmem:[%s1463_s3] sm:$0xff] }
 0x202   : > { %838 = vmatpush.bf16.msra.mxu0 %v1011_v20 }
 0x207   : > { %v1097_v29 = vpop.eup %1096  ;;  %v604_v30 = vpop.f32.mrf.mxu2 }
 0x208   : > { %666 = vperm.xlu0 %1077, %v1097_v29   ;;  %v499_v32 = vpop.xlane.xlu1 %498  ;;  %v649_v33 = vld [vmem:[#allocation3 + $0x18] sm:$0xff] }
 0x209   : > { %v509_v34 = vadd.f32 %v499_v32, %v493_v31  ;;  %1098 = vrcp.f32 %v649_v33 }
 0x20b   : > { %514 = vst.msk [vmem:[#allocation3] sm:$0xff] %vm322_vm1, %v509_v34 }
 0x20f   : > { %v1099_v36 = vpop.eup %1098  ;;  %v606_v37 = vpop.f32.mrf.mxu2 }
 0x210   : > { %v623_v38 = vpop.f32.mrf.mxu3  ;;  %671 = vperm.xlu1 %1078, %v1099_v36   ;;  %v502_v40 = vpop.xlane.xlu2 %501 }
 0x211   : > { %v510_v41 = vadd.f32 %v502_v40, %v494_v39 }
 0x212   : > { %v646_v42 = vld [vmem:[#allocation3] sm:$0xff] }
 0x213   : > { %515 = vst.msk [vmem:[#allocation3 + $0x8] sm:$0xff] %vm322_vm1, %v510_v41  ;;  %v566_v43 = vpop.f32.mrf.mxu0  ;;  %1100 = vrcp.f32 %v646_v42 }
 0x218   : > { %v625_v45 = vpop.f32.mrf.mxu3  ;;  %v535_v46 = vpop.permute.xlu2 %534 }
 0x219   : > { %v1101_v47 = vpop.eup %1100  ;;  %v544_v48 = vmul.f32 %v535_v46, %v520_v44 }
 0x21a   : > { %656 = vperm.xlu2 %1076, %v1101_v47   ;;  %v647_v49 = vld [vmem:[#allocation3 + $0x8] sm:$0xff] }
 0x21b   : > { %v629_v50 = vadd.f32 %v604_v30, %v544_v48  ;;  %v568_v51 = vpop.f32.mrf.mxu0  ;;  %v585_v52 = vpop.f32.mrf.mxu1  ;;  %1102 = vrcp.f32 %v647_v49 }
 0x21d   : > { %633 = vst.msk [vmem:[#allocation4 + $0x10] sm:$0xff] %vm331_vm0, %v629_v50 }
 0x220   : > { %v540_v55 = vpop.permute.xlu2 %539  ;;  %v525_v56 = vpop.permute.xlu1 %524 }
 0x221   : > { %v1103_v57 = vpop.eup %1102  ;;  %v545_v58 = vmul.f32 %v540_v55, %v521_v53  ;;  %v542_v59 = vmul.f32 %v525_v56, %v518_v54 }
 0x222   : > { %661 = vperm.xlu2 %1076, %v1103_v57  }
 0x223   : > { %v630_v60 = vadd.f32 %v623_v38, %v545_v58  ;;  %v627_v61 = vadd.f32 %v566_v43, %v542_v59  ;;  %v587_v62 = vpop.f32.mrf.mxu1 }
 0x224   : > { %v644_v9 = vld [vmem:[#allocation4 + $0x10] sm:$0xff] }
 0x225   : > { %634 = vst.msk [vmem:[#allocation4 + $0x18] sm:$0xff] %vm331_vm0, %v630_v60 }
 0x226   : > { %631 = vst.msk [vmem:[#allocation4] sm:$0xff] %vm331_vm0, %v627_v61 }
 0x228   : > { %v530_v0 = vpop.permute.xlu2 %529 }
 0x229   : > { %v543_v1 = vmul.f32 %v530_v0, %v519_v63 }
 0x22b   : > { %v628_v2 = vadd.f32 %v585_v52, %v543_v1 }
 0x22c   : > { %v645_v22 = vld [vmem:[#allocation4 + $0x18] sm:$0xff] }
 0x22d   : > { %632 = vst.msk [vmem:[#allocation4 + $0x8] sm:$0xff] %vm331_vm0, %v628_v2  ;;  %v642_v4 = vld [vmem:[#allocation4] sm:$0xff] }
 0x234   : > { %v643_v15 = vld [vmem:[#allocation4 + $0x8] sm:$0xff] }
 0x274   : > { %v657_v3 = vpop.permute.xlu2 %656 }
 0x275   : > { %v674_v5 = vmul.f32 %v657_v3, %v642_v4 }
 0x277   : > { %v681_v12 = vrot.slane %v674_v5, 4 }
 0x27a   : > { %v667_v8 = vpop.permute.xlu0 %666 }
 0x27b   : > { %v676_v10 = vmul.f32 %v667_v8, %v644_v9 }
 0x27c   : > { %v662_v11 = vpop.permute.xlu2 %661 }
 0x27d   : > { %v678_v13 = vrot.slane %v676_v10, 4  ;;  %v682_v16 = vsel %vm679_vm3, %v676_v10, %v681_v12  ;;  %v675_v17 = vmul.f32 %v662_v11, %v643_v15 }
 0x27e   : > { %v690_v21 = vperm.slane %v682_v16, %v685_v14 }
 0x27f   : > { %v680_v18 = vsel %vm679_vm3, %v678_v13, %v674_v5  ;;  %v693_v24 = vrot.slane %v675_v17, 4 }
 0x280   : > { %v686_v26 = vperm.slane %v680_v18, %v685_v14  ;;  %v717_v30 = vrot.slane %v690_v21, 4 }
 0x282   : > { %v672_v23 = vpop.permute.xlu1 %671  ;;  %v705_v33 = vrot.slane %v686_v26, 4 }
 0x283   : > { %v677_v25 = vmul.f32 %v672_v23, %v645_v22 }
 0x285   : > { %v691_v28 = vrot.slane %v677_v25, 4  ;;  %v694_v29 = vsel %vm679_vm3, %v677_v25, %v693_v24 }
 0x286   : > { %v702_v31 = vperm.slane %v694_v29, %v685_v14 }
 0x287   : > { %v692_v32 = vsel %vm679_vm3, %v691_v28, %v675_v17  ;;  %v1079_v28 = vld [vmem:[%s1464_s4] ss:$0 sm:$0xff] }
 0x288   : > { %v698_v34 = vperm.slane %v692_v32, %v685_v14  ;;  %v715_v35 = vrot.slane %v702_v31, 4  ;;  %v718_v36 = vsel %vm679_vm3, %v702_v31, %v717_v30 }
 0x289   : > { %v726_v37 = vperm.slane %v718_v36, %v709_v27 }
 0x28a   : > { %v703_v38 = vrot.slane %v698_v34, 4  ;;  %v706_v39 = vsel %vm679_vm3, %v698_v34, %v705_v33  ;;  %v716_v40 = vsel %vm679_vm3, %v715_v35, %v690_v21 }
 0x28b   : > { %v714_v41 = vperm.slane %v706_v39, %v709_v27  ;;  %v722_v42 = vperm.slane %v716_v40, %v709_v27  ;;  %v733_v43 = vrot.slane %v726_v37, 4 }
 0x28c   : > { %v704_v44 = vsel %vm679_vm3, %v703_v38, %v686_v26 }
 0x28d   : > { %v710_v45 = vperm.slane %v704_v44, %v709_v27  ;;  %v729_v46 = vrot.slane %v714_v41, 4  ;;  %v731_v47 = vrot.slane %v722_v42, 4  ;;  %v734_v48 = vsel %vm679_vm3, 0.0, %v733_v43 }
 0x28e   : > { %v746_v49 = vsel %vm679_vm3, %v733_v43, %v722_v42  ;;  %v751_v50 = vrot.slane %v734_v48, 4 }
 0x28f   : > { %v730_v51 = vsel %vm679_vm3, 0.0, %v729_v46  ;;  %v727_v52 = vrot.slane %v710_v45, 4  ;;  %v732_v53 = vsel %vm679_vm3, 0.0, %v731_v47  ;;  %v735_v54 = vsel %vm679_vm3, %v729_v46, %v710_v45 }
 0x290   : > { %v740_v55 = vrot.slane %v730_v51, 4  ;;  %v739_v56 = vperm.slane %v735_v54, %v685_v14  ;;  %v750_v57 = vperm.slane %v746_v49, %v685_v14  ;;  %v752_v58 = vsel %vm679_vm3, %v751_v50, %v732_v53 }
 0x291   : > { %v728_v59 = vsel %vm679_vm3, 0.0, %v727_v52  ;;  %v756_v60 = vperm.slane %v752_v58, %v685_v14 }
 0x292   : > { %v741_v61 = vsel %vm679_vm3, %v740_v55, %v728_v59  ;;  %v759_v62 = vrot.slane %v739_v56, 4  ;;  %v771_v63 = vrot.slane %v750_v57, 4 }
 0x293   : > { %v745_v0 = vperm.slane %v741_v61, %v685_v14  ;;  %v769_v1 = vrot.slane %v756_v60, 4 }
 0x294   : > { %v772_v2 = vsel %vm679_vm3, %v756_v60, %v771_v63 }
 0x295   : > { %v760_v3 = vsel %vm679_vm3, %v745_v0, %v759_v62  ;;  %v780_v4 = vperm.slane %v772_v2, %v709_v27  ;;  %v757_v5 = vrot.slane %v745_v0, 4  ;;  %v770_v6 = vsel %vm679_vm3, %v769_v1, %v750_v57 }
 0x296   : > { %v768_v7 = vperm.slane %v760_v3, %v709_v27  ;;  %v776_v8 = vperm.slane %v770_v6, %v709_v27 }
 0x297   : > { %v785_v9 = vrot.slane %v780_v4, 4  ;;  %v758_v10 = vsel %vm679_vm3, %v757_v5, %v739_v56 }
 0x298   : > { %v787_v11 = vrot.slane %v768_v7, 4  ;;  %v764_v12 = vperm.slane %v758_v10, %v709_v27  ;;  %v781_v13 = vrot.slane %v776_v8, 4 }
 0x299   : > { %v786_v15 = vsel %vm679_vm3, %v785_v9, %v768_v7 }
 0x29a   : > { %794 = vrot.lane.b32.xlu0 %v786_v15, %s1189_s24  ;;  %v788_v14 = vsel %vm679_vm3, %v780_v4, %v787_v11  ;;  %v783_v16 = vrot.slane %v764_v12, 4  ;;  %v782_v17 = vsel %vm679_vm3, %v781_v13, %v764_v12  ;;  %s292_s24 = scalar_lea.vmem [#allocation5], %s980_s12 }
 0x29b   : > { %798 = vrot.lane.b32.xlu2 %v788_v14, %s1190_s25  ;;  %s859_s25 = sshll.u32 %s292_s24, 4  ;;  %s860_s25 = int_to_ptr.vmem [resolvable:$true] %s859_s25 }
 0x29c   : > { %v784_v18 = vsel %vm679_vm3, %v776_v8, %v783_v16 }
 0x29d   : > { %790 = vrot.lane.b32.xlu1 %v784_v18, %s1191_s27  ;;  %s861_s27 = sshll.u32 %s857_s15, 4  ;;  %s862_s27 = int_to_ptr.hbm [resolvable:$true] %s861_s27 }
 0x29e   : > { %s1118_s21 = sshra.s32 %s862_s27, 4  ;;  %s1119_s21 = int_to_ptr.hbm [resolvable:$true] %s1118_s21 }
 0x29f   : > { %s1120_s7 = scalar_lea.hbm %s1119_s21, 8  ;;  %p1125_p1 = scmp.lt.s32.totalorder %s1119_s21, %s1465_s5 }
 0x2a0   : > { %p1121_p12 = scmp.ne.s32.totalorder %s1119_s21, %s1120_s7  ;;  %p1126_p2 = scmp.lt.s32.totalorder %s1124_s11, %s1120_s7 }
 0x2a2   : > { %p1122_p13 = pnand %p1121_p12, %p1262_p4  ;;  %p1127_p3 = por %p1126_p2, %p1125_p1 }
 0x2a4   : > { %p1123_p0 = pneg %p1122_p13 }
 0x2a6   : > { %p1128_p5 = pnand %p1127_p3, %p1123_p0 }
 0x2f5   : > { %v799_v24 = vpop.permute.xlu2 %798 }
 0x30c   : > { %v795_v22 = vpop.permute.xlu0 %794 }
 0x30f   : > { %v791_v21 = vpop.permute.xlu1 %790 }
 0x310   : > { %v801_v23 = vsel %vm331_vm0, %v782_v17, %v791_v21 }
 0x311   : > { %v803_v25 = vsel %vm802_vm4, %v801_v23, %v795_v22 }
 0x312   : > { %v805_v26 = vsel %vm804_vm5, %v803_v25, %v799_v24 }
 0x313   : > { %v806_v27 = vpack.c.bf16 %v805_v26, %v805_v26 }
 0x315   : > { %1003 = vmatmul.msk.bf16.vlgmr.msra.gmra.mxu0 %vm827_vm6, %v806_v27 }
 0x392   : > { %v840_v29 = vpop.f32.mrf.mxu0 }
 0x393   : > { %v841_v30 = vadd.f32 %v1079_v28, %v840_v29 }
 0x395   : > { %844 = vst.msk [vmem:[%s292_s24] sm:$0xff] %vm827_vm6, %v841_v30 }
 0x396   : > { %1131 = shalt.err (!%p1128_p5)
}
 0x397   : > { %1013 = dma.vmem_to_hbm [thread:$0]  (%p1262_p4), %s860_s25, 128, %s862_s27, %s846_s29  }
 0x39a   : > { %v842_v31 = vpop.f32.mrf.mxu0 }
 0x39b PF: > { %p1019_p6 = scmp.ge.s32.totalorder %s1182_s23, 2  ;;  %s873_s10 = sand.u32 1, %s1162_s18  }
 0x39c   : > { %s874_s14 = scalar_lea.sflag [#allocation6], %s873_s10 }
 0x39d   : > { %p1016_p7 = pnand %p1019_p6, %p1269_p8 }
 0x39f   : > { %p1017_p9 = pneg %p1016_p7 }
 0x3a1   : > { %1157 = dma.done.wait (%p1017_p9), %s874_s14, 128  }
 0x3a2   : > { %1159 = vsyncadd (%p1017_p9), %s874_s14, 4294967168  ;;  %s18_s23 = sadd.s32 1, %s1182_s23   ;;  %s1468_s18 = smov %s1166_s19 }
 0x3a3   : > { %p15_p10 = scmp.ge.s32.totalorder %s18_s23, 4   ;;  %s1469_s19 = smov %s1170_s20 }
 0x3a4   : > { %s1470_s20 = smov %s1275_s6  ;;  %s1471_s21 = smov %s1178_s22 }
 0x3a5   : > { %s1472_s22 = smov %s1474_s26  ;;  %17 = sbr.rel (!%p15_p10) target bundleno = 4 (0x4), region = 89 }
 0x3aa   :  { %880 = vsyncpa [#allocation6], 1 }
 0x3ab   :  { %882 = vsyncpa [#allocation6 + $0x1], 1 }

</bundles_post_ra>
